<compile_context>
chip_gen: v6e
topology: v6e:2x2x1
jax: 0.10.0
libtpu: 0.0.40
codegen_flags: <defaults>
</compile_context>

<pallas_src>
import jax
import jax.numpy as jnp
from jax.experimental import pallas as pl
from jax.experimental.pallas import tpu as pltpu

_SUBLANE = 8  # f32 sublane count


def _round_up(n, m):
    return ((n + m - 1) // m) * m


def mlp_kernel(x_ref, w1_ref, b1_ref, w2_ref, b2_ref, o_ref):
    # h = relu(x @ W1 + b1)   -- MXU matmul, f32 accumulation; bias/relu on VPU.
    h = jnp.dot(x_ref[...], w1_ref[...], preferred_element_type=jnp.float32)
    h = jnp.maximum(h + b1_ref[...], 0.0)
    # y = h @ W2 + b2
    y = jnp.dot(h, w2_ref[...], preferred_element_type=jnp.float32)
    o_ref[...] = (y + b2_ref[...]).astype(o_ref.dtype)


def mlp_forward(x, w1, b1, w2, b2, *, block_b_cap=2048, grid_min_batch=1025):
    """x: (B, K); w1: (K, H); b1: (H,)|(1,H); w2: (H, N); b2: (N,)|(1,N)."""
    B, K = x.shape
    H = w1.shape[1]
    N = w2.shape[1]

    x = x.astype(jnp.float32)
    w1 = w1.astype(jnp.float32)
    b1 = b1.reshape(1, H).astype(jnp.float32)
    w2 = w2.astype(jnp.float32)
    b2 = b2.reshape(1, N).astype(jnp.float32)

    if B < grid_min_batch:
        # Small batch (spec's B=1 case): no grid, no padding, no slicing.
        # Full (tiny) operands live in VMEM; single kernel invocation.
        return pl.pallas_call(
            mlp_kernel,
            out_shape=jax.ShapeDtypeStruct((B, N), jnp.float32),
            in_specs=[pl.BlockSpec(memory_space=pltpu.MemorySpace.VMEM)] * 5,
            out_specs=pl.BlockSpec(memory_space=pltpu.MemorySpace.VMEM),
        )(x, w1, b1, w2, b2)

    # Large batch: grid over B only. Tile size picked from B so that
    #  * there are at least 2 grid steps (v7x megacore gets real work on both TCs),
    #  * tiles are <= ~2048 rows (amortizes per-step overhead, tiny VMEM footprint),
    #  * the trailing tile is partial (masked write-back) instead of padding B.
    num_tiles = max(2, pl.cdiv(B, block_b_cap))
    block_b = _round_up(pl.cdiv(B, num_tiles), _SUBLANE)
    grid_b = pl.cdiv(B, block_b)

    return pl.pallas_call(
        mlp_kernel,
        out_shape=jax.ShapeDtypeStruct((B, N), jnp.float32),
        grid_spec=pltpu.PrefetchScalarGridSpec(
            num_scalar_prefetch=0,
            grid=(grid_b,),
            in_specs=[
                pl.BlockSpec((block_b, K), lambda i: (i, 0)),   # x tile (narrow dim = full K)
                pl.BlockSpec((K, H), lambda i: (0, 0)),         # W1, VMEM-resident
                pl.BlockSpec((1, H), lambda i: (0, 0)),         # b1
                pl.BlockSpec((H, N), lambda i: (0, 0)),         # W2
                pl.BlockSpec((1, N), lambda i: (0, 0)),         # b2
            ],
            out_specs=pl.BlockSpec((block_b, N), lambda i: (i, 0)),
        ),
        compiler_params=pltpu.CompilerParams(
            dimension_semantics=("parallel",)),
    )(x, w1, b1, w2, b2)


def init_params(key):
    # nn.Linear-style parameters stored transposed for x @ W:
    # linear1: W1 (10, 32), b1 (32);  linear2: W2 (32, 8), b2 (8)
    k1, k2, k3, k4 = jax.random.split(key, 4)
    bound1 = 1.0 / jnp.sqrt(10.0)
    bound2 = 1.0 / jnp.sqrt(32.0)
    w1 = jax.random.uniform(k1, (10, 32), jnp.float32, -bound1, bound1)
    b1 = jax.random.uniform(k2, (32,), jnp.float32, -bound1, bound1)
    w2 = jax.random.uniform(k3, (32, 8), jnp.float32, -bound2, bound2)
    b2 = jax.random.uniform(k4, (8,), jnp.float32, -bound2, bound2)
    return w1, b1, w2, b2


def _ref(x, w1, b1, w2, b2):
    return jnp.maximum(x @ w1 + b1.reshape(1, -1), 0.0) @ w2 + b2.reshape(1, -1)


if __name__ == "__main__":
    key = jax.random.PRNGKey(0)
    kx, kp, kb, kc = jax.random.split(key, 4)
    w1, b1, w2, b2 = init_params(kp)

    # Spec case: x1 = torch.randn(1, 10)  -> single-invocation (no-grid) path.
    x1 = jax.random.normal(kx, (1, 10), jnp.float32)
    out = jax.block_until_ready(mlp_forward(x1, w1, b1, w2, b2))
    assert out.shape == (1, 8)
    assert jnp.allclose(out, _ref(x1, w1, b1, w2, b2), atol=1e-5, rtol=1e-5)

    # Batched case exercising the gridded (parallel-over-B) path with even tiles.
    xb = jax.random.normal(kb, (2048, 10), jnp.float32)
    outb = jax.block_until_ready(
        mlp_forward(xb, w1, b1, w2, b2, block_b_cap=512, grid_min_batch=1))
    assert outb.shape == (2048, 8)
    assert jnp.allclose(outb, _ref(xb, w1, b1, w2, b2), atol=1e-4, rtol=1e-4)

    # Ragged batch: partial trailing tile (no rounding of B up to a block multiple).
    xc = jax.random.normal(kc, (1000, 10), jnp.float32)
    outc = jax.block_until_ready(
        mlp_forward(xc, w1, b1, w2, b2, block_b_cap=512, grid_min_batch=1))
    assert outc.shape == (1000, 8)
    assert jnp.allclose(outc, _ref(xc, w1, b1, w2, b2), atol=1e-4, rtol=1e-4)

    print("KERNEL_OK")
</pallas_src>

<mosaic_0001>
module attributes {stable_mosaic.version = 11 : i64} {
  func.func @mlp_kernel(%arg0: memref<1x10xf32, #tpu.memory_space<vmem>>, %arg1: memref<10x32xf32, #tpu.memory_space<vmem>>, %arg2: memref<1x32xf32, #tpu.memory_space<vmem>>, %arg3: memref<32x8xf32, #tpu.memory_space<vmem>>, %arg4: memref<1x8xf32, #tpu.memory_space<vmem>>, %arg5: memref<1x8xf32, #tpu.memory_space<vmem>>) attributes {dimension_semantics = [], scalar_prefetch = 0 : i64, scratch_operands = 0 : i64, tpu.core_type = #tpu.core_type<tc>} {
    %c0 = arith.constant 0 : index
    %c0_0 = arith.constant 0 : index
    %0 = vector.load %arg0[%c0, %c0_0] : memref<1x10xf32, #tpu.memory_space<vmem>>, vector<1x10xf32>
    %c0_1 = arith.constant 0 : index
    %c0_2 = arith.constant 0 : index
    %1 = vector.load %arg1[%c0_1, %c0_2] : memref<10x32xf32, #tpu.memory_space<vmem>>, vector<10x32xf32>
    %cst = arith.constant dense<0.000000e+00> : vector<1x32xf32>
    %2 = tpu.matmul %0, %1, %cst {dimension_numbers = #tpu.dot_dimension_numbers<[1], [0], [0], [1], [0, 0, 1, 1], [], []>} : vector<1x10xf32>, vector<10x32xf32>, vector<1x32xf32> -> vector<1x32xf32>
    %c0_3 = arith.constant 0 : index
    %c0_4 = arith.constant 0 : index
    %3 = vector.load %arg2[%c0_3, %c0_4] : memref<1x32xf32, #tpu.memory_space<vmem>>, vector<1x32xf32>
    %4 = arith.addf %2, %3 : vector<1x32xf32>
    %cst_5 = arith.constant 0.000000e+00 : f32
    %5 = vector.broadcast %cst_5 : f32 to vector<1x32xf32>
    %6 = arith.maximumf %4, %5 : vector<1x32xf32>
    %c0_6 = arith.constant 0 : index
    %c0_7 = arith.constant 0 : index
    %7 = vector.load %arg3[%c0_6, %c0_7] : memref<32x8xf32, #tpu.memory_space<vmem>>, vector<32x8xf32>
    %cst_8 = arith.constant dense<0.000000e+00> : vector<1x8xf32>
    %8 = tpu.matmul %6, %7, %cst_8 {dimension_numbers = #tpu.dot_dimension_numbers<[1], [0], [0], [1], [0, 0, 1, 1], [], []>} : vector<1x32xf32>, vector<32x8xf32>, vector<1x8xf32> -> vector<1x8xf32>
    %c0_9 = arith.constant 0 : index
    %c0_10 = arith.constant 0 : index
    %9 = vector.load %arg4[%c0_9, %c0_10] : memref<1x8xf32, #tpu.memory_space<vmem>>, vector<1x8xf32>
    %10 = arith.addf %8, %9 : vector<1x8xf32>
    %c0_11 = arith.constant 0 : index
    %c0_12 = arith.constant 0 : index
    %11 = vector.load %arg5[%c0_11, %c0_12] : memref<1x8xf32, #tpu.memory_space<vmem>>, vector<1x8xf32>
    tpu.vector_store %arg5[%c0_11, %c0_12], %10 {strides = array<i32>} : memref<1x8xf32, #tpu.memory_space<vmem>>, vector<1x8xf32>,
    return
  }
}

</mosaic_0001>

<bundles_post_ra>
// kernel: tpu_custom_call.1
= control target key start
LH: loop header
LB: loop body
LE: loop exit
PB: predicated region body
PF: predicated region fallthrough
CT: control target
= control target key end

     0   :  { %vm29_vm0 = vcmask 1041408   ;;  %v253_v1 = vmov 0.0   ;;  %vm254_vm1 = vmmov 0   ;;  %vm25_vm2 = vcmask 80896   ;;  %s316_s0 = inlined_call_operand.vmem [shape: f32[1,10], index: 0, kind: input, shape index: {}]   ;;  %s317_s1 = inlined_call_operand.vmem [shape: f32[10,32], index: 1, kind: input, shape index: {}]   ;;  %s318_s2 = inlined_call_operand.vmem [shape: f32[1,32], index: 2, kind: input, shape index: {}]   ;;  %s319_s3 = inlined_call_operand.vmem [shape: f32[32,8], index: 3, kind: input, shape index: {}]   ;;  %s320_s4 = inlined_call_operand.vmem [shape: f32[1,8], index: 4, kind: input, shape index: {}]   ;;  %s321_s5 = inlined_call_operand.hbm [shape: f32[1,8], index: 5, kind: output, shape index: {}]  }
   0x1   :  { %v23_v0 = vld [vmem:[%s317_s1 + $0x8] sm:$0x3]  ;;  %210 = vmatprep.subr.mxu0 %v253_v1  ;;  %v22_v2 = vld [vmem:[%s317_s1] sm:$0xff]  ;;  %214 = vmatprep.mubr.msk.f32.mxu0 %vm254_vm1, %v253_v1  ;;  %v107_v3 = vld [vmem:[%s319_s3 + $0x18] sm:$0xff] }
   0x2   :  { %211 = vmatpush3.msk.msra.mxu0 %vm29_vm0, %v23_v0  ;;  %v21_v4 = vld [vmem:[%s316_s0] sm:$0x1]  ;;  %217 = vmatprep.subr.mxu1 %v253_v1 }
   0x3   :  { %10 = vsyncpa [#allocation3], 0  ;;  %212 = vmatprep.subr.mxu0 %v253_v1  ;;  %218 = vmatpush3.msra.mxu1 %v107_v3  ;;  %v106_v5 = vld [vmem:[%s319_s3 + $0x10] sm:$0xff]  ;;  %v105_v6 = vld [vmem:[%s319_s3 + $0x8] sm:$0xff]  ;;  %vm109_vm3 = vcmask 261120   ;;  %s255_s9 = smov [#allocation2]  }
   0x4   :  { %213 = vmatpush3.msra.mxu0 %v22_v2  ;;  %219 = vmatprep.subr.mxu1 %v253_v1  ;;  %v104_v7 = vld [vmem:[%s319_s3] sm:$0xff]  ;;  %s191_s10 = sshll.u32 %s255_s9, 4  ;;  %vm183_vm4 = vcmask 57344   ;;  %s192_s10 = int_to_ptr.vmem [resolvable:$true] %s191_s10 }
   0x5   :  { %215 = vmatmul.mubr.msk.f32.vlgmr.msra.gmra.mxu0 %vm25_vm2, %v21_v4  ;;  %225 = vmatprep.mubr.msk.f32.mxu1 %vm254_vm1, %v253_v1  ;;  %v24_v8 = vld [vmem:[%s318_s2] sm:$0x1]  ;;  %s231_s3 = scalar_lea.vmem %s192_s10, 16  ;;  %s235_s2 = scalar_lea.vmem %s192_s10, 32 }
   0x6   :  { %220 = vmatpush3.msra.mxu1 %v106_v5  ;;  %v108_v13 = vld [vmem:[%s320_s4] sm:$0x1]  ;;  %p232_p0 = scmp.ne.s32.totalorder %s192_s10, %s231_s3  ;;  %p236_p1 = scmp.lt.s32.totalorder %s192_s10, %s192_s10 }
   0x7   :  { %221 = vmatprep.subr.mxu1 %v253_v1  ;;  %p237_p2 = scmp.lt.s32.totalorder %s235_s2, %s231_s3 }
   0x8   :  { %222 = vmatpush3.msra.mxu1 %v105_v6 }
   0x9   :  { %223 = vmatprep.subr.mxu1 %v253_v1  ;;  %p238_p3 = por %p237_p2, %p236_p1 }
   0xa   :  { %224 = vmatpush3.msra.mxu1 %v104_v7 }
   0xb   :  { %p239_p4 = pnand %p238_p3, %p232_p0 }
  0xc5   :  { %v99_v9 = vpop.f32.mrf.mxu0 }
  0xc6   :  { %v100_v10 = vadd.f32 %v99_v9, %v24_v8 }
  0xc7   :  { %v216_v11 = vpop.f32.mrf.mxu0 }
  0xc8   :  { %v103_v12 = vmax.f32 %v100_v10, 0.0 }
  0xca   :  { %226 = vmatmul.mubr.msk.f32.vlgmr.msra.gmra.mxu1 %vm109_vm3, %v103_v12 }
 0x18a   :  { %v179_v14 = vpop.f32.mrf.mxu1 }
 0x18b   :  { %v180_v15 = vadd.f32 %v179_v14, %v108_v13 }
 0x18c   :  { %v227_v16 = vpop.f32.mrf.mxu1 }
 0x18d   :  { %184 = vst.msk [vmem:[#allocation2] sm:$0x1] %vm183_vm4, %v180_v15 }
 0x18e   :  { %242 = shalt.err (!%p239_p4)
}
 0x18f   :  { %194 = dma.vmem_to_hbm [thread:$0]  %s192_s10, 16, %s321_s5, [#allocation3]  }
 0x190   :  { %251 = dma.done.wait [#allocation3], 16  }
 0x191   :  { %252 = vsyncadd [#allocation3], 4294967280 }
 0x192   :  { %198 = vsyncpa [#allocation3], 1 }

</bundles_post_ra>
